<compile_context>
chip_gen: v6e
topology: v6e:2x2x1
jax: 0.10.0
libtpu: 0.0.40
codegen_flags: <defaults>
</compile_context>

<pallas_src>
import jax
import jax.numpy as jnp
from jax import lax
from jax.experimental import pallas as pl
from jax.experimental.pallas import tpu as pltpu

# ---- small, module-consistent dimensions ------------------------------------
SEQ = 8          # tokenized sequence length
HIDDEN = 32      # transformer hidden size
FFN = 64         # feed-forward inner size
NUM_LABELS = 19  # tweet-topic-21-multi has 19 topic labels
VOCAB = 100      # synthetic vocab
LANE = 128       # TPU lane width; every block is padded to a 128x128 tile

# ---- combined weight slab: (128 rows, N_TILES * 128 lanes), bf16 -------------
# Each weight matrix / the bias block occupies its own lane-aligned 128x128
# tile, zero-padded.  Padded rows/cols are zero so contracting over the full
# 128 lanes is exact and padded activation lanes stay zero end-to-end.
T_EMB = 0    # embedding table      (VOCAB x HIDDEN)
T_WQ = 1     # query proj           (HIDDEN x HIDDEN), 1/sqrt(H) folded in
T_WK = 2     # key proj
T_WV = 3     # value proj           (WQ/WK/WV contiguous -> fused QKV matmul)
T_WO = 4     # attention output proj
T_W1 = 5     # FFN in               (HIDDEN x FFN)
T_W2 = 6     # FFN out              (FFN x HIDDEN)
T_WD = 7     # head dense           (HIDDEN x HIDDEN)
T_WC = 8     # head label proj      (HIDDEN x NUM_LABELS)
T_BIAS = 9   # bias / LayerNorm rows (8 lane-dense rows, see *_R below)
N_TILES = 10
SLAB_COLS = N_TILES * LANE

# bias-tile row indices
B1_R, B2_R, LN1G_R, LN1B_R, LN2G_R, LN2B_R, BD_R, BC_R = range(8)

ID2LABEL = [
    "arts_&_culture", "business_&_entrepreneurs", "celebrity_&_pop_culture",
    "diaries_&_daily_life", "family", "fashion_&_style", "film_tv_&_video",
    "fitness_&_health", "food_&_dining", "gaming", "learning_&_educational",
    "music", "news_&_social_concern", "other_hobbies", "relationships",
    "science_&_technology", "sports", "travel_&_adventure",
    "youth_&_student_life",
]


def _col(t):
    return t * LANE


# ---- fused Pallas kernel -----------------------------------------------------
def topic_infer_kernel(ids_ref, w_ref, scores_ref):
    """Embedding gather + encoder layer + classification head + sigmoid."""
    f32, bf16 = jnp.float32, jnp.bfloat16
    inv_h = 1.0 / float(HIDDEN)
    bias_c = _col(T_BIAS)

    # bias / LayerNorm params: one lane-dense (8,128) tile (~1 vreg), f32 for
    # the VPU.  Padded lanes are zero, which keeps padded activation lanes zero.
    bias = w_ref[0:8, bias_c:bias_c + LANE].astype(f32)
    b1 = bias[B1_R:B1_R + 1]
    b2 = bias[B2_R:B2_R + 1]
    ln1_g = bias[LN1G_R:LN1G_R + 1]
    ln1_b = bias[LN1B_R:LN1B_R + 1]
    ln2_g = bias[LN2G_R:LN2G_R + 1]
    ln2_b = bias[LN2B_R:LN2B_R + 1]
    bd = bias[BD_R:BD_R + 1]
    bc = bias[BC_R:BC_R + 1]

    # --- embedding lookup as a lane-dense one-hot matmul (MXU, no dyn slices) --
    ids = ids_ref[...]                                              # (SEQ, 1)
    vocab_iota = lax.broadcasted_iota(jnp.int32, (SEQ, LANE), 1)
    onehot = (ids == vocab_iota).astype(f32).astype(bf16)           # (8, 128)
    x = jnp.dot(onehot, w_ref[:, _col(T_EMB):_col(T_EMB) + LANE],
                preferred_element_type=f32)                         # (8, 128)

    # --- self-attention (single head), fused Q/K/V projection ---
    qkv = jnp.dot(x.astype(bf16),
                  w_ref[:, _col(T_WQ):_col(T_WV) + LANE],           # (128, 384)
                  preferred_element_type=f32)                       # (8, 384)
    q = qkv[:, 0 * LANE:1 * LANE]                                   # tile-aligned
    k = qkv[:, 1 * LANE:2 * LANE]
    v = qkv[:, 2 * LANE:3 * LANE]

    # 1/sqrt(HIDDEN) folded into wq at packing time; padded lanes are zero so
    # contracting over all 128 lanes (q @ k^T without materializing k.T) is exact.
    s = lax.dot_general(q.astype(bf16), k.astype(bf16),
                        (((1,), (1,)), ((), ())),
                        preferred_element_type=f32)                 # (8, 8)
    # TODO(synk): no attention/padding mask — fine for fixed-length synthetic
    # input, the real tokenizer output would need a mask here.
    m = jnp.max(s, axis=-1, keepdims=True)
    p = jnp.exp(s - m)
    p = p * pl.reciprocal(jnp.sum(p, axis=-1, keepdims=True), approx=True)
    attn = jnp.dot(p.astype(bf16), v.astype(bf16),
                   preferred_element_type=f32)                      # (8, 128)
    y = jnp.dot(attn.astype(bf16), w_ref[:, _col(T_WO):_col(T_WO) + LANE],
                preferred_element_type=f32)

    # --- residual + layernorm 1 (decoupled sum / sum-of-squares; padded lanes
    #     are zero so dividing by HIDDEN counts only the 32 real features) ---
    h = x + y
    mu = jnp.sum(h, axis=-1, keepdims=True) * inv_h
    ms = jnp.sum(h * h, axis=-1, keepdims=True) * inv_h
    var = ms - mu * mu
    h = (h - mu) * lax.rsqrt(var + 1e-5) * ln1_g + ln1_b            # pad lanes -> 0

    # --- feed-forward ---
    f = jnp.dot(h.astype(bf16), w_ref[:, _col(T_W1):_col(T_W1) + LANE],
                preferred_element_type=f32) + b1
    # TODO(synk): HF RoBERTa uses exact (erf) GELU; tanh approximation kept
    # for robust Mosaic lowering — negligible for the 0.2 threshold decision.
    f = jax.nn.gelu(f, approximate=True)
    f = jnp.dot(f.astype(bf16), w_ref[:, _col(T_W2):_col(T_W2) + LANE],
                preferred_element_type=f32) + b2

    # --- residual + layernorm 2 ---
    h2 = h + f
    mu2 = jnp.sum(h2, axis=-1, keepdims=True) * inv_h
    ms2 = jnp.sum(h2 * h2, axis=-1, keepdims=True) * inv_h
    var2 = ms2 - mu2 * mu2
    h2 = (h2 - mu2) * lax.rsqrt(var2 + 1e-5) * ln2_g + ln2_b

    # --- classification head: <s> token, dense+tanh, project, sigmoid ---
    pooled = h2[0:1, :]                                             # (1, 128)
    d = jnp.tanh(jnp.dot(pooled.astype(bf16),
                         w_ref[:, _col(T_WD):_col(T_WD) + LANE],
                         preferred_element_type=f32) + bd)
    logits = jnp.dot(d.astype(bf16), w_ref[:, _col(T_WC):_col(T_WC) + LANE],
                     preferred_element_type=f32) + bc               # (1, 128)
    scores_ref[...] = jax.nn.sigmoid(logits)   # == scipy.special.expit


# ---- wrappers ----------------------------------------------------------------
def _vmem_spec():
    return pl.BlockSpec(memory_space=pltpu.MemorySpace.VMEM)


def init_params(key):
    """Deterministic synthetic weights packed into ONE lane-aligned bf16 slab."""
    ks = jax.random.split(key, 9)

    def w(k, shape, scale=0.02):
        return (scale * jax.random.normal(k, shape)).astype(jnp.float32)

    emb = w(ks[0], (VOCAB, HIDDEN))
    wq = w(ks[1], (HIDDEN, HIDDEN)) * (1.0 / float(HIDDEN) ** 0.5)  # fold scale
    wk = w(ks[2], (HIDDEN, HIDDEN))
    wv = w(ks[3], (HIDDEN, HIDDEN))
    wo = w(ks[4], (HIDDEN, HIDDEN))
    w1 = w(ks[5], (HIDDEN, FFN))
    w2 = w(ks[6], (FFN, HIDDEN))
    wd = w(ks[7], (HIDDEN, HIDDEN))
    wc = w(ks[8], (HIDDEN, NUM_LABELS))

    b1 = jnp.zeros((FFN,), jnp.float32)
    b2 = jnp.zeros((HIDDEN,), jnp.float32)
    ln1_g = jnp.ones((HIDDEN,), jnp.float32)
    ln1_b = jnp.zeros((HIDDEN,), jnp.float32)
    ln2_g = jnp.ones((HIDDEN,), jnp.float32)
    ln2_b = jnp.zeros((HIDDEN,), jnp.float32)
    bd = jnp.zeros((HIDDEN,), jnp.float32)
    bc = jnp.zeros((NUM_LABELS,), jnp.float32)

    def tile(mat):
        r, c = mat.shape
        t = jnp.zeros((LANE, LANE), jnp.float32)
        return t.at[:r, :c].set(mat)

    bias_tile = jnp.zeros((LANE, LANE), jnp.float32)
    for r, vec in [(B1_R, b1), (B2_R, b2), (LN1G_R, ln1_g), (LN1B_R, ln1_b),
                   (LN2G_R, ln2_g), (LN2B_R, ln2_b), (BD_R, bd), (BC_R, bc)]:
        bias_tile = bias_tile.at[r, :vec.shape[0]].set(vec)

    # tile order must match T_* indices
    slab = jnp.concatenate(
        [tile(emb), tile(wq), tile(wk), tile(wv), tile(wo),
         tile(w1), tile(w2), tile(wd), tile(wc), bias_tile], axis=1)
    assert slab.shape == (LANE, SLAB_COLS)
    return {"slab": slab.astype(jnp.bfloat16)}


def topic_infer_forward(token_ids, params):
    """Numeric part of TopicInfer.forward: token ids -> sigmoid scores [L]."""
    # TODO(synk): the real HF tokenizer + pretrained RoBERTa weights cannot be
    # reproduced here; tokenization is replaced by synthetic int32 token ids.
    ids2d = token_ids.reshape(SEQ, 1).astype(jnp.int32)
    scores_padded = pl.pallas_call(
        topic_infer_kernel,
        out_shape=jax.ShapeDtypeStruct((1, LANE), jnp.float32),
        in_specs=[_vmem_spec(), _vmem_spec()],
        out_specs=_vmem_spec(),
    )(ids2d, params["slab"])
    # padded label lanes carry sigmoid(0) = 0.5 -> slice BEFORE thresholding
    return scores_padded[0, :NUM_LABELS]


def build_topic_string(scores):
    """Python glue: threshold at 0.2 and assemble the topic prompt string."""
    predictions = (scores >= 0.2).astype(int)
    topic = ""
    for i in range(len(predictions)):
        if predictions[i]:
            topic += ID2LABEL[i].replace("_&_", " and ").replace("_", " ")
    return f"represent the {topic} title:"


if __name__ == "__main__":
    key = jax.random.PRNGKey(0)
    pkey, tkey = jax.random.split(key)
    params = init_params(pkey)

    # Synthetic "tokenized text": deterministic token ids, shape [SEQ].
    token_ids = jax.random.randint(tkey, (SEQ,), 0, VOCAB, dtype=jnp.int32)

    scores = topic_infer_forward(token_ids, params)
    scores = jax.block_until_ready(scores)

    assert scores.shape == (NUM_LABELS,)
    assert bool(jnp.all((scores >= 0.0) & (scores <= 1.0)))

    _topic = build_topic_string(jax.device_get(scores))  # string assembly (glue)
    print("KERNEL_OK")
</pallas_src>

<mosaic_0001>
module attributes {stable_mosaic.version = 11 : i64} {
  func.func @topic_infer_kernel(%arg0: memref<8x1xi32, #tpu.memory_space<vmem>>, %arg1: memref<128x1280xbf16, #tpu.memory_space<vmem>>, %arg2: memref<1x128xf32, #tpu.memory_space<vmem>>) attributes {dimension_semantics = [], scalar_prefetch = 0 : i64, scratch_operands = 0 : i64, tpu.core_type = #tpu.core_type<tc>} {
    %c0 = arith.constant 0 : index
    %c1152 = arith.constant 1152 : index
    %0 = vector.load %arg1[%c0, %c1152] : memref<128x1280xbf16, #tpu.memory_space<vmem>>, vector<8x128xbf16>
    %1 = arith.extf %0 : vector<8x128xbf16> to vector<8x128xf32>
    %2 = vector.extract_strided_slice %1 {offsets = [0, 0], sizes = [1, 128], strides = [1, 1]} : vector<8x128xf32> to vector<1x128xf32>
    %3 = vector.extract_strided_slice %1 {offsets = [1, 0], sizes = [1, 128], strides = [1, 1]} : vector<8x128xf32> to vector<1x128xf32>
    %4 = vector.extract_strided_slice %1 {offsets = [2, 0], sizes = [1, 128], strides = [1, 1]} : vector<8x128xf32> to vector<1x128xf32>
    %5 = vector.extract_strided_slice %1 {offsets = [3, 0], sizes = [1, 128], strides = [1, 1]} : vector<8x128xf32> to vector<1x128xf32>
    %6 = vector.extract_strided_slice %1 {offsets = [4, 0], sizes = [1, 128], strides = [1, 1]} : vector<8x128xf32> to vector<1x128xf32>
    %7 = vector.extract_strided_slice %1 {offsets = [5, 0], sizes = [1, 128], strides = [1, 1]} : vector<8x128xf32> to vector<1x128xf32>
    %8 = vector.extract_strided_slice %1 {offsets = [6, 0], sizes = [1, 128], strides = [1, 1]} : vector<8x128xf32> to vector<1x128xf32>
    %9 = vector.extract_strided_slice %1 {offsets = [7, 0], sizes = [1, 128], strides = [1, 1]} : vector<8x128xf32> to vector<1x128xf32>
    %c0_0 = arith.constant 0 : index
    %c0_1 = arith.constant 0 : index
    %10 = vector.load %arg0[%c0_0, %c0_1] : memref<8x1xi32, #tpu.memory_space<vmem>>, vector<8x1xi32>
    %11 = tpu.iota {dimensions = array<i32: 1>} : vector<8x128xi32>
    %12 = vector.broadcast %10 : vector<8x1xi32> to vector<8x128xi32>
    %13 = arith.cmpi eq, %12, %11 : vector<8x128xi32>
    %14 = arith.extui %13 : vector<8x128xi1> to vector<8x128xi32>
    %15 = arith.sitofp %14 : vector<8x128xi32> to vector<8x128xf32>
    %16 = arith.truncf %15 : vector<8x128xf32> to vector<8x128xbf16>
    %c0_2 = arith.constant 0 : index
    %c0_3 = arith.constant 0 : index
    %17 = vector.load %arg1[%c0_2, %c0_3] : memref<128x1280xbf16, #tpu.memory_space<vmem>>, vector<128x128xbf16>
    %cst = arith.constant dense<0.000000e+00> : vector<8x128xf32>
    %18 = tpu.matmul %16, %17, %cst {dimension_numbers = #tpu.dot_dimension_numbers<[1], [0], [0], [1], [0, 0, 1, 1], [], []>} : vector<8x128xbf16>, vector<128x128xbf16>, vector<8x128xf32> -> vector<8x128xf32>
    %19 = arith.truncf %18 : vector<8x128xf32> to vector<8x128xbf16>
    %c0_4 = arith.constant 0 : index
    %c128 = arith.constant 128 : index
    %20 = vector.load %arg1[%c0_4, %c128] : memref<128x1280xbf16, #tpu.memory_space<vmem>>, vector<128x384xbf16>
    %cst_5 = arith.constant dense<0.000000e+00> : vector<8x384xf32>
    %21 = tpu.matmul %19, %20, %cst_5 {dimension_numbers = #tpu.dot_dimension_numbers<[1], [0], [0], [1], [0, 0, 1, 1], [], []>} : vector<8x128xbf16>, vector<128x384xbf16>, vector<8x384xf32> -> vector<8x384xf32>
    %22 = vector.extract_strided_slice %21 {offsets = [0, 0], sizes = [8, 128], strides = [1, 1]} : vector<8x384xf32> to vector<8x128xf32>
    %23 = vector.extract_strided_slice %21 {offsets = [0, 128], sizes = [8, 128], strides = [1, 1]} : vector<8x384xf32> to vector<8x128xf32>
    %24 = vector.extract_strided_slice %21 {offsets = [0, 256], sizes = [8, 128], strides = [1, 1]} : vector<8x384xf32> to vector<8x128xf32>
    %25 = arith.truncf %22 : vector<8x128xf32> to vector<8x128xbf16>
    %26 = arith.truncf %23 : vector<8x128xf32> to vector<8x128xbf16>
    %cst_6 = arith.constant dense<0.000000e+00> : vector<8x8xf32>
    %27 = tpu.matmul %25, %26, %cst_6 {dimension_numbers = #tpu.dot_dimension_numbers<[1], [1], [0], [0], [0, 0, 1, 0], [], []>} : vector<8x128xbf16>, vector<8x128xbf16>, vector<8x8xf32> -> vector<8x8xf32>
    %cst_7 = arith.constant dense<0xFF800000> : vector<8xf32>
    %28 = vector.multi_reduction <maximumf>, %27, %cst_7 [1] : vector<8x8xf32> to vector<8xf32>
    %29 = vector.shape_cast %28 : vector<8xf32> to vector<8x1xf32>
    %30 = vector.broadcast %29 : vector<8x1xf32> to vector<8x8xf32>
    %31 = arith.subf %27, %30 : vector<8x8xf32>
    %32 = math.exp %31 : vector<8x8xf32>
    %cst_8 = arith.constant dense<0.000000e+00> : vector<8xf32>
    %33 = vector.multi_reduction <add>, %32, %cst_8 [1] : vector<8x8xf32> to vector<8xf32>
    %34 = vector.shape_cast %33 : vector<8xf32> to vector<8x1xf32>
    %35 = tpu.reciprocal %34 {approx = true} : vector<8x1xf32> -> vector<8x1xf32>
    %36 = vector.broadcast %35 : vector<8x1xf32> to vector<8x8xf32>
    %37 = arith.mulf %32, %36 : vector<8x8xf32>
    %38 = arith.truncf %37 : vector<8x8xf32> to vector<8x8xbf16>
    %39 = arith.truncf %24 : vector<8x128xf32> to vector<8x128xbf16>
    %cst_9 = arith.constant dense<0.000000e+00> : vector<8x128xf32>
    %40 = tpu.matmul %38, %39, %cst_9 {dimension_numbers = #tpu.dot_dimension_numbers<[1], [0], [0], [1], [0, 0, 1, 1], [], []>} : vector<8x8xbf16>, vector<8x128xbf16>, vector<8x128xf32> -> vector<8x128xf32>
    %41 = arith.truncf %40 : vector<8x128xf32> to vector<8x128xbf16>
    %c0_10 = arith.constant 0 : index
    %c512 = arith.constant 512 : index
    %42 = vector.load %arg1[%c0_10, %c512] : memref<128x1280xbf16, #tpu.memory_space<vmem>>, vector<128x128xbf16>
    %cst_11 = arith.constant dense<0.000000e+00> : vector<8x128xf32>
    %43 = tpu.matmul %41, %42, %cst_11 {dimension_numbers = #tpu.dot_dimension_numbers<[1], [0], [0], [1], [0, 0, 1, 1], [], []>} : vector<8x128xbf16>, vector<128x128xbf16>, vector<8x128xf32> -> vector<8x128xf32>
    %44 = arith.addf %18, %43 : vector<8x128xf32>
    %cst_12 = arith.constant dense<0.000000e+00> : vector<8xf32>
    %45 = vector.multi_reduction <add>, %44, %cst_12 [1] : vector<8x128xf32> to vector<8xf32>
    %46 = vector.shape_cast %45 : vector<8xf32> to vector<8x1xf32>
    %cst_13 = arith.constant 3.125000e-02 : f32
    %47 = vector.broadcast %cst_13 : f32 to vector<8x1xf32>
    %48 = arith.mulf %46, %47 : vector<8x1xf32>
    %49 = arith.mulf %44, %44 : vector<8x128xf32>
    %cst_14 = arith.constant dense<0.000000e+00> : vector<8xf32>
    %50 = vector.multi_reduction <add>, %49, %cst_14 [1] : vector<8x128xf32> to vector<8xf32>
    %51 = vector.shape_cast %50 : vector<8xf32> to vector<8x1xf32>
    %cst_15 = arith.constant 3.125000e-02 : f32
    %52 = vector.broadcast %cst_15 : f32 to vector<8x1xf32>
    %53 = arith.mulf %51, %52 : vector<8x1xf32>
    %54 = arith.mulf %48, %48 : vector<8x1xf32>
    %55 = arith.subf %53, %54 : vector<8x1xf32>
    %56 = vector.broadcast %48 : vector<8x1xf32> to vector<8x128xf32>
    %57 = arith.subf %44, %56 : vector<8x128xf32>
    %cst_16 = arith.constant 9.99999974E-6 : f32
    %58 = vector.broadcast %cst_16 : f32 to vector<8x1xf32>
    %59 = arith.addf %55, %58 : vector<8x1xf32>
    %60 = math.rsqrt %59 : vector<8x1xf32>
    %61 = vector.broadcast %60 : vector<8x1xf32> to vector<8x128xf32>
    %62 = arith.mulf %57, %61 : vector<8x128xf32>
    %63 = vector.broadcast %4 : vector<1x128xf32> to vector<8x128xf32>
    %64 = arith.mulf %62, %63 : vector<8x128xf32>
    %65 = vector.broadcast %5 : vector<1x128xf32> to vector<8x128xf32>
    %66 = arith.addf %64, %65 : vector<8x128xf32>
    %67 = arith.truncf %66 : vector<8x128xf32> to vector<8x128xbf16>
    %c0_17 = arith.constant 0 : index
    %c640 = arith.constant 640 : index
    %68 = vector.load %arg1[%c0_17, %c640] : memref<128x1280xbf16, #tpu.memory_space<vmem>>, vector<128x128xbf16>
    %cst_18 = arith.constant dense<0.000000e+00> : vector<8x128xf32>
    %69 = tpu.matmul %67, %68, %cst_18 {dimension_numbers = #tpu.dot_dimension_numbers<[1], [0], [0], [1], [0, 0, 1, 1], [], []>} : vector<8x128xbf16>, vector<128x128xbf16>, vector<8x128xf32> -> vector<8x128xf32>
    %70 = vector.broadcast %2 : vector<1x128xf32> to vector<8x128xf32>
    %71 = arith.addf %69, %70 : vector<8x128xf32>
    %72 = arith.mulf %71, %71 : vector<8x128xf32>
    %73 = arith.mulf %71, %72 : vector<8x128xf32>
    %cst_19 = arith.constant 4.471500e-02 : f32
    %74 = vector.broadcast %cst_19 : f32 to vector<8x128xf32>
    %75 = arith.mulf %74, %73 : vector<8x128xf32>
    %76 = arith.addf %71, %75 : vector<8x128xf32>
    %cst_20 = arith.constant 0.797884583 : f32
    %77 = vector.broadcast %cst_20 : f32 to vector<8x128xf32>
    %78 = arith.mulf %77, %76 : vector<8x128xf32>
    %79 = math.tanh %78 : vector<8x128xf32>
    %cst_21 = arith.constant 1.000000e+00 : f32
    %80 = vector.broadcast %cst_21 : f32 to vector<8x128xf32>
    %81 = arith.addf %80, %79 : vector<8x128xf32>
    %cst_22 = arith.constant 5.000000e-01 : f32
    %82 = vector.broadcast %cst_22 : f32 to vector<8x128xf32>
    %83 = arith.mulf %82, %81 : vector<8x128xf32>
    %84 = arith.mulf %71, %83 : vector<8x128xf32>
    %85 = arith.truncf %84 : vector<8x128xf32> to vector<8x128xbf16>
    %c0_23 = arith.constant 0 : index
    %c768 = arith.constant 768 : index
    %86 = vector.load %arg1[%c0_23, %c768] : memref<128x1280xbf16, #tpu.memory_space<vmem>>, vector<128x128xbf16>
    %cst_24 = arith.constant dense<0.000000e+00> : vector<8x128xf32>
    %87 = tpu.matmul %85, %86, %cst_24 {dimension_numbers = #tpu.dot_dimension_numbers<[1], [0], [0], [1], [0, 0, 1, 1], [], []>} : vector<8x128xbf16>, vector<128x128xbf16>, vector<8x128xf32> -> vector<8x128xf32>
    %88 = vector.broadcast %3 : vector<1x128xf32> to vector<8x128xf32>
    %89 = arith.addf %87, %88 : vector<8x128xf32>
    %90 = arith.addf %66, %89 : vector<8x128xf32>
    %cst_25 = arith.constant dense<0.000000e+00> : vector<8xf32>
    %91 = vector.multi_reduction <add>, %90, %cst_25 [1] : vector<8x128xf32> to vector<8xf32>
    %92 = vector.shape_cast %91 : vector<8xf32> to vector<8x1xf32>
    %cst_26 = arith.constant 3.125000e-02 : f32
    %93 = vector.broadcast %cst_26 : f32 to vector<8x1xf32>
    %94 = arith.mulf %92, %93 : vector<8x1xf32>
    %95 = arith.mulf %90, %90 : vector<8x128xf32>
    %cst_27 = arith.constant dense<0.000000e+00> : vector<8xf32>
    %96 = vector.multi_reduction <add>, %95, %cst_27 [1] : vector<8x128xf32> to vector<8xf32>
    %97 = vector.shape_cast %96 : vector<8xf32> to vector<8x1xf32>
    %cst_28 = arith.constant 3.125000e-02 : f32
    %98 = vector.broadcast %cst_28 : f32 to vector<8x1xf32>
    %99 = arith.mulf %97, %98 : vector<8x1xf32>
    %100 = arith.mulf %94, %94 : vector<8x1xf32>
    %101 = arith.subf %99, %100 : vector<8x1xf32>
    %102 = vector.broadcast %94 : vector<8x1xf32> to vector<8x128xf32>
    %103 = arith.subf %90, %102 : vector<8x128xf32>
    %cst_29 = arith.constant 9.99999974E-6 : f32
    %104 = vector.broadcast %cst_29 : f32 to vector<8x1xf32>
    %105 = arith.addf %101, %104 : vector<8x1xf32>
    %106 = math.rsqrt %105 : vector<8x1xf32>
    %107 = vector.broadcast %106 : vector<8x1xf32> to vector<8x128xf32>
    %108 = arith.mulf %103, %107 : vector<8x128xf32>
    %109 = vector.broadcast %6 : vector<1x128xf32> to vector<8x128xf32>
    %110 = arith.mulf %108, %109 : vector<8x128xf32>
    %111 = vector.broadcast %7 : vector<1x128xf32> to vector<8x128xf32>
    %112 = arith.addf %110, %111 : vector<8x128xf32>
    %113 = vector.extract_strided_slice %112 {offsets = [0, 0], sizes = [1, 128], strides = [1, 1]} : vector<8x128xf32> to vector<1x128xf32>
    %114 = arith.truncf %113 : vector<1x128xf32> to vector<1x128xbf16>
    %c0_30 = arith.constant 0 : index
    %c896 = arith.constant 896 : index
    %115 = vector.load %arg1[%c0_30, %c896] : memref<128x1280xbf16, #tpu.memory_space<vmem>>, vector<128x128xbf16>
    %cst_31 = arith.constant dense<0.000000e+00> : vector<1x128xf32>
    %116 = tpu.matmul %114, %115, %cst_31 {dimension_numbers = #tpu.dot_dimension_numbers<[1], [0], [0], [1], [0, 0, 1, 1], [], []>} : vector<1x128xbf16>, vector<128x128xbf16>, vector<1x128xf32> -> vector<1x128xf32>
    %117 = arith.addf %116, %8 : vector<1x128xf32>
    %118 = math.tanh %117 : vector<1x128xf32>
    %119 = arith.truncf %118 : vector<1x128xf32> to vector<1x128xbf16>
    %c0_32 = arith.constant 0 : index
    %c1024 = arith.constant 1024 : index
    %120 = vector.load %arg1[%c0_32, %c1024] : memref<128x1280xbf16, #tpu.memory_space<vmem>>, vector<128x128xbf16>
    %cst_33 = arith.constant dense<0.000000e+00> : vector<1x128xf32>
    %121 = tpu.matmul %119, %120, %cst_33 {dimension_numbers = #tpu.dot_dimension_numbers<[1], [0], [0], [1], [0, 0, 1, 1], [], []>} : vector<1x128xbf16>, vector<128x128xbf16>, vector<1x128xf32> -> vector<1x128xf32>
    %122 = arith.addf %121, %9 : vector<1x128xf32>
    %123 = arith.negf %122 : vector<1x128xf32>
    %124 = math.exp %123 : vector<1x128xf32>
    %cst_34 = arith.constant 1.000000e+00 : f32
    %125 = vector.broadcast %cst_34 : f32 to vector<1x128xf32>
    %126 = arith.addf %125, %124 : vector<1x128xf32>
    %127 = arith.divf %125, %126 : vector<1x128xf32>
    %c0_35 = arith.constant 0 : index
    %c0_36 = arith.constant 0 : index
    %128 = vector.load %arg2[%c0_35, %c0_36] : memref<1x128xf32, #tpu.memory_space<vmem>>, vector<1x128xf32>
    tpu.vector_store %arg2[%c0_35, %c0_36], %127 {strides = array<i32>} : memref<1x128xf32, #tpu.memory_space<vmem>>, vector<1x128xf32>,
    return
  }
}

</mosaic_0001>

<bundles_post_ra>
// kernel: tpu_custom_call.1
= control target key start
LH: loop header
LB: loop body
LE: loop exit
PB: predicated region body
PF: predicated region fallthrough
CT: control target
= control target key end

     0   :  { %7 = vsyncpa [#allocation3], 0  ;;  %s1687_s0 = inlined_call_operand.vmem [shape: s32[8,1], index: 0, kind: input, shape index: {}]   ;;  %s1688_s1 = inlined_call_operand.hbm [shape: bf16[128,1280], index: 1, kind: input, shape index: {}]   ;;  %s1689_s2 = inlined_call_operand.hbm [shape: f32[1,128], index: 2, kind: output, shape index: {}]  }
   0x1   :  { %8 = vsyncpa [#allocation4], 0  ;;  %s1551_s9 = smov [#allocation2]  }
   0x2   :  { %s16_s10 = sshll.u32 %s1551_s9, 4  ;;  %s17_s10 = int_to_ptr.vmem [resolvable:$true] %s16_s10 }
   0x3   :  { %s1515_s11 = scalar_lea.vmem %s17_s10, 10240  ;;  %p1520_p1 = scmp.lt.s32.totalorder %s17_s10, %s17_s10 }
   0x4   :  { %p1516_p0 = scmp.ne.s32.totalorder %s17_s10, %s1515_s11  ;;  %p1521_p2 = scmp.lt.s32.totalorder %s1515_s11, %s1515_s11 }
   0x6   :  { %p1522_p3 = por %p1521_p2, %p1520_p1 }
   0x8   :  { %p1523_p4 = pnand %p1522_p3, %p1516_p0 }
   0xa   :  { %1526 = shalt.err (!%p1523_p4)
}
   0xb   :  { %s1552_s12 = smov 640   ;;  %s1553_s13 = smov 40  }
   0xc   :  { %22 = dma.hbm_to_vmem [thread:$0]  %s1688_s1, 10240, %s17_s10, [#allocation3], %s1552_s12, %s1552_s12, %s1553_s13  }
   0xd   :  { %1547 = dma.done.wait [#allocation3], 10240  }
   0xe   :  { %1548 = vsyncadd [#allocation3], 4294957056  ;;  %v1554_v0 = vmov 0   ;;  %v1555_v1 = vmov 0.0   ;;  %vm1556_vm0 = vmmov 0   ;;  %v29_v2 = vld [vmem:[%s1687_s0] sm:$0xff]  ;;  %v30_v26 = vlaneseq }
   0xf   :  { %1410 = vset.pattern.permute.xlu0 %v1554_v0  ;;  %1250 = vmatprep.subr.bf16.mxu0 %v1555_v1  ;;  %v1411_v3 = vld [vmem:[#allocation2 + $0x230] ss:$40 sps:$4 sm:$0xff]   ;;  %v1412_v4 = vld [vmem:[#allocation2 + $0x1e0] ss:$40 sps:$4 sm:$0xff]   ;;  %v1421_v7 = vld [vmem:[#allocation2 + $0x234] ss:$40 sps:$4 sm:$0xff]  }
  0x10   :  { %336 = vmatprep.mubr.bf16.mxu1 %v1554_v0  ;;  %1266 = vmatprep.mubr.msk.bf16.mxu0 %vm1556_vm0, %v1555_v1  ;;  %v1413_v5 = vld [vmem:[#allocation2 + $0x190] ss:$40 sps:$4 sm:$0xff]   ;;  %v1414_v8 = vld [vmem:[#allocation2 + $0x140] ss:$40 sps:$4 sm:$0xff]   ;;  %v1425_v10 = vld [vmem:[#allocation2 + $0x1e4] ss:$40 sps:$4 sm:$0xff]  }
  0x11   :  { %33 = vperm.xlu0 %1410, %v29_v2   ;;  %1251 = vmatpush3.bf16.msra.mxu0 %v1411_v3  ;;  %v1419_v6 = vld [vmem:[#allocation2 + $0x238] ss:$40 sps:$4 sm:$0xff]   ;;  %v1423_v9 = vld [vmem:[#allocation2 + $0x1e8] ss:$40 sps:$4 sm:$0xff]   ;;  %v1429_v13 = vld [vmem:[#allocation2 + $0x194] ss:$40 sps:$4 sm:$0xff]  }
  0x12   :  { %1252 = vmatprep.subr.bf16.mxu0 %v1555_v1  ;;  %304 = vmatprep.subr.bf16.mxu1 %v1419_v6  ;;  %v1427_v11 = vld [vmem:[#allocation2 + $0x198] ss:$40 sps:$4 sm:$0xff]   ;;  %v1431_v14 = vld [vmem:[#allocation2 + $0x148] ss:$40 sps:$4 sm:$0xff]   ;;  %v1433_v16 = vld [vmem:[#allocation2 + $0x144] ss:$40 sps:$4 sm:$0xff]  }
  0x13   :  { %305 = vmatpush1.bf16.msra.mxu1 %v1421_v7  ;;  %v1415_v12 = vld [vmem:[#allocation2 + $0xf0] ss:$40 sps:$4 sm:$0xff]   ;;  %v1416_v15 = vld [vmem:[#allocation2 + $0xa0] ss:$40 sps:$4 sm:$0xff]   ;;  %v1437_v19 = vld [vmem:[#allocation2 + $0xf4] ss:$40 sps:$4 sm:$0xff]  }
  0x14   :  { %306 = vmatprep.subr.bf16.mxu1 %v1423_v9  ;;  %v1435_v17 = vld [vmem:[#allocation2 + $0xf8] ss:$40 sps:$4 sm:$0xff]   ;;  %v1439_v21 = vld [vmem:[#allocation2 + $0xa8] ss:$40 sps:$4 sm:$0xff]   ;;  %v1441_v22 = vld [vmem:[#allocation2 + $0xa4] ss:$40 sps:$4 sm:$0xff]  }
  0x15   :  { %1253 = vmatpush3.bf16.msra.mxu0 %v1412_v4  ;;  %v1417_v18 = vld [vmem:[#allocation2 + $0x50] ss:$40 sps:$4 sm:$0xff]   ;;  %v1418_v20 = vld [vmem:[#allocation2] ss:$40 sps:$4 sm:$0xff]   ;;  %v1445_v24 = vld [vmem:[#allocation2 + $0x54] ss:$40 sps:$4 sm:$0xff]  }
  0x16   :  { %1254 = vmatprep.subr.bf16.mxu0 %v1555_v1  ;;  %v1443_v23 = vld [vmem:[#allocation2 + $0x58] ss:$40 sps:$4 sm:$0xff]   ;;  %v1447_v25 = vld [vmem:[#allocation2 + $0x8] ss:$40 sps:$4 sm:$0xff]   ;;  %v31_v27 = vand.u32 127, %v30_v26  ;;  %vm444_vm3 = vcmask 1043456  }
  0x17   :  { %307 = vmatpush1.bf16.msra.mxu1 %v1425_v10  ;;  %v1422_v29 = vld [vmem:[#allocation2 + $0x23c] ss:$40 sps:$4 sm:$0xff]   ;;  %v1557_v30 = vmov 1.0|1.0   ;;  %v1426_v31 = vld [vmem:[#allocation2 + $0x1ec] ss:$40 sps:$4 sm:$0xff]  }
  0x18   :  { %308 = vmatprep.subr.bf16.mxu1 %v1427_v11  ;;  %v1430_v32 = vld [vmem:[#allocation2 + $0x19c] ss:$40 sps:$4 sm:$0xff]   ;;  %v1434_v33 = vld [vmem:[#allocation2 + $0x14c] ss:$40 sps:$4 sm:$0xff]   ;;  %vm427_vm4 = vcmask 64512   ;;  %s1558_s0 = smov [#allocation5]  }
  0x19   :  { %1255 = vmatpush3.bf16.msra.mxu0 %v1413_v5  ;;  %v1438_v34 = vld [vmem:[#allocation2 + $0xfc] ss:$40 sps:$4 sm:$0xff]   ;;  %v1442_v35 = vld [vmem:[#allocation2 + $0xac] ss:$40 sps:$4 sm:$0xff]   ;;  %v1451_v6 = vld [vmem:[#allocation2 + $0x240] ss:$40 sps:$4 sm:$0xff]  }
  0x1a   :  { %1256 = vmatprep.subr.bf16.mxu0 %v1555_v1  ;;  %v1446_v36 = vld [vmem:[#allocation2 + $0x5c] ss:$40 sps:$4 sm:$0xff]   ;;  %v1450_v38 = vld [vmem:[#allocation2 + $0xc] ss:$40 sps:$4 sm:$0xff]   ;;  %v1453_v9 = vld [vmem:[#allocation2 + $0x1a0] ss:$40 sps:$4 sm:$0xff]  }
  0x1b   :  { %309 = vmatpush1.bf16.msra.mxu1 %v1429_v13  ;;  %v1449_v37 = vld [vmem:[#allocation2 + $0x4] ss:$40 sps:$4 sm:$0xff]   ;;  %v1454_v10 = vld [vmem:[#allocation2 + $0x150] ss:$40 sps:$4 sm:$0xff]   ;;  %v1455_v11 = vld [vmem:[#allocation2 + $0x100] ss:$40 sps:$4 sm:$0xff]  }
  0x1c   :  { %310 = vmatprep.subr.bf16.mxu1 %v1431_v14  ;;  %v1457_v13 = vld [vmem:[#allocation2 + $0x60] ss:$40 sps:$4 sm:$0xff]   ;;  %v1458_v14 = vld [vmem:[#allocation2 + $0x10] ss:$40 sps:$4 sm:$0xff]   ;;  %s1097_s1 = sshll.u32 %s1558_s0, 4  ;;  %s1098_s1 = int_to_ptr.vmem [resolvable:$true] %s1097_s1 }
  0x1d   :  { %1257 = vmatpush3.bf16.msra.mxu0 %v1414_v8  ;;  %v1452_v8 = vld [vmem:[#allocation2 + $0x1f0] ss:$40 sps:$4 sm:$0xff]   ;;  %s1527_s18 = scalar_lea.vmem %s1098_s1, 16  ;;  %s1531_s19 = scalar_lea.vmem %s1098_s1, 32 }
  0x1e   :  { %1258 = vmatprep.subr.bf16.mxu0 %v1555_v1  ;;  %p1528_p5 = scmp.ne.s32.totalorder %s1098_s1, %s1527_s18  ;;  %p1532_p6 = scmp.lt.s32.totalorder %s1098_s1, %s1098_s1 }
  0x1f   :  { %311 = vmatpush1.bf16.msra.mxu1 %v1433_v16  ;;  %p1533_p7 = scmp.lt.s32.totalorder %s1531_s19, %s1527_s18 }
  0x20   :  { %312 = vmatprep.subr.bf16.mxu1 %v1435_v17 }
  0x21   :  { %1259 = vmatpush3.bf16.msra.mxu0 %v1415_v12  ;;  %v1456_v12 = vld [vmem:[#allocation2 + $0xb0] ss:$40 sps:$4 sm:$0xff]   ;;  %p1534_p8 = por %p1533_p7, %p1532_p6 }
  0x22   :  { %1260 = vmatprep.subr.bf16.mxu0 %v1555_v1 }
  0x23   :  { %313 = vmatpush1.bf16.msra.mxu1 %v1437_v19  ;;  %p1535_p9 = pnand %p1534_p8, %p1528_p5 }
  0x24   :  { %314 = vmatprep.subr.bf16.mxu1 %v1439_v21 }
  0x25   :  { %1261 = vmatpush3.bf16.msra.mxu0 %v1416_v15 }
  0x26   :  { %1262 = vmatprep.subr.bf16.mxu0 %v1555_v1 }
  0x27   :  { %315 = vmatpush1.bf16.msra.mxu1 %v1441_v22 }
  0x28   :  { %316 = vmatprep.subr.bf16.mxu1 %v1443_v23 }
  0x29   :  { %1263 = vmatpush3.bf16.msra.mxu0 %v1417_v18 }
  0x2a   :  { %1264 = vmatprep.subr.bf16.mxu0 %v1555_v1 }
  0x2b   :  { %317 = vmatpush1.bf16.msra.mxu1 %v1445_v24 }
  0x2c   :  { %318 = vmatprep.subr.bf16.mxu1 %v1447_v25 }
  0x2d   :  { %1265 = vmatpush3.bf16.msra.mxu0 %v1418_v20 }
  0x2e   :  { %1270 = vmatprep.subr.bf16.mxu0 %v1555_v1 }
  0x2f   :  { %319 = vmatpush1.bf16.msra.mxu1 %v1449_v37 }
  0x30   :  { %1296 = vmatprep.subr.bf16.mxu1 %v1555_v1 }
  0x8c   :  { %v34_v28 = vpop.permute.xlu0 %33 }
  0x8d   :  { %vm35_vm1 = vcmp.eq.s32.totalorder %v34_v28, %v31_v27  ;;  %v1459_v27 = vld [vmem:[#allocation2 + $0x244] ss:$40 sps:$4 sm:$0xff]   ;;  %v1460_v28 = vld [vmem:[#allocation2 + $0x1f4] ss:$40 sps:$4 sm:$0xff]  }
  0x8e   :  { %vm1115_vm2 = vmpackc.low %vm35_vm1, %vm35_vm1 }
  0x8f   :  { %1267 = vmatmul.mubr.msk.bf16.vlgmr.msra.gmra.mxu0 %vm1115_vm2, %v1557_v30  ;;  %v1462_v30 = vld [vmem:[#allocation2 + $0x154] ss:$40 sps:$4 sm:$0xff]  }
  0x90   :  { %1271 = vmatpush3.bf16.msra.mxu0 %v1422_v29  ;;  %1286 = vmatprep.mubr.msk.bf16.mxu0 %vm1556_vm0, %v1555_v1  ;;  %v1461_v29 = vld [vmem:[#allocation2 + $0x1a4] ss:$40 sps:$4 sm:$0xff]  }
  0x91   :  { %1272 = vmatprep.subr.bf16.mxu0 %v1555_v1 }
  0x94   :  { %1273 = vmatpush3.bf16.msra.mxu0 %v1426_v31  ;;  %v1463_v31 = vld [vmem:[#allocation2 + $0x104] ss:$40 sps:$4 sm:$0xff]  }
  0x95   :  { %1274 = vmatprep.subr.bf16.mxu0 %v1555_v1 }
  0x98   :  { %1275 = vmatpush3.bf16.msra.mxu0 %v1430_v32  ;;  %v1464_v32 = vld [vmem:[#allocation2 + $0xb4] ss:$40 sps:$4 sm:$0xff]  }
  0x99   :  { %1276 = vmatprep.subr.bf16.mxu0 %v1555_v1 }
  0x9c   :  { %1277 = vmatpush3.bf16.msra.mxu0 %v1434_v33  ;;  %v1465_v33 = vld [vmem:[#allocation2 + $0x64] ss:$40 sps:$4 sm:$0xff]  }
  0x9d   :  { %1278 = vmatprep.subr.bf16.mxu0 %v1555_v1 }
  0xa0   :  { %1279 = vmatpush3.bf16.msra.mxu0 %v1438_v34  ;;  %v1466_v34 = vld [vmem:[#allocation2 + $0x14] ss:$40 sps:$4 sm:$0xff]  }
  0xa1   :  { %1280 = vmatprep.subr.bf16.mxu0 %v1555_v1 }
  0xa4   :  { %1281 = vmatpush3.bf16.msra.mxu0 %v1442_v35 }
  0xa5   :  { %1282 = vmatprep.subr.bf16.mxu0 %v1555_v1 }
  0xa8   :  { %1283 = vmatpush3.bf16.msra.mxu0 %v1446_v36 }
  0xa9   :  { %1284 = vmatprep.subr.bf16.mxu0 %v1555_v1 }
  0xac   :  { %1285 = vmatpush3.bf16.msra.mxu0 %v1450_v38 }
  0xad   :  { %1290 = vmatprep.subr.bf16.mxu0 %v1555_v1 }
 0x14f   :  { %v1603_v39 = vpop.f32.mrf.mxu0 }
 0x150   :  { %v143_v40 = vpack.c.bf16 %v1603_v39, %v1603_v39 }
 0x151   :  { %v1268_v41 = vpop.f32.mrf.mxu0 }
 0x152   :  { %337 = vmatmul.mubr.bf16.vlgmr.msra.gmra.mxu1 %v143_v40  ;;  %1287 = vmatmul.mubr.bf16.vlgmr.msra.gmra.mxu0 %v143_v40 }
 0x153   :  { %v140_v42 = vpop.f32.mrf.mxu0  ;;  %1292 = vmatprep.mubr.msk.bf16.mxu0 %vm1556_vm0, %v1555_v1  ;;  %1298 = vmatprep.mubr.msk.bf16.mxu1 %vm1556_vm0, %v1555_v1 }
 0x154   :  { %v1640_v42 = vshrl.u32 %v30_v26, 7  ;;  %v1467_v26 = vld [vmem:[#allocation2 + $0x248] ss:$40 sps:$4 sm:$0xff]  }
 0x155   :  { %v1269_v43 = vpop.f32.mrf.mxu0 }
 0x156   :  { %v27_v43 = vld [vmem:[#allocation2 + $0x24] sm:$0xf] }
 0x212   :  { %v338_v44 = vpop.f32.mrf.mxu1  ;;  %v379_v45 = vpop.f32.mrf.mxu0 }
 0x213   :  { %v440_v46 = vpack.c.bf16 %v379_v45, %v379_v45  ;;  %v385_v55 = vpack.c.bf16 %v338_v44, %v338_v44  ;;  %v1642_v44 = vunpack.c.l.bf16 %v27_v43  ;;  %v609_v45 = vsub.s32 2, %v1640_v42 }
 0x214   :  { %v340_v47 = vpop.f32.mrf.mxu1  ;;  %v1288_v48 = vpop.f32.mrf.mxu0 }
 0x215   :  { %v446_v49 = vsel %vm444_vm3, %v440_v46, 0  ;;  %v386_v50 = vpack.c.bf16 %v340_v47, %v340_v47  ;;  %v614_v46 = vsub.s32 3, %v1640_v42  ;;  %v610_v48 = vrot.slane %v1642_v44, %v609_v45 }
 0x216   :  { %v342_v51 = vpop.f32.mrf.mxu1  ;;  %v382_v52 = vpop.f32.mrf.mxu0  ;;  %1297 = vmatpush3.bf16.msra.mxu1 %v446_v49 }
 0x217   :  { %1291 = vmatpush3.bf16.xpose.msra.mxu0 %v386_v50  ;;  %1302 = vmatprep.subr.bf16.mxu1 %v1555_v1  ;;  %v615_v51 = vrot.slane %v1642_v44, %v614_v46  ;;  %v860_v46 = vsub.s32 4, %v1640_v42 }
 0x218   :  { %v343_v53 = vpop.f32.mrf.mxu1  ;;  %v1289_v54 = vpop.f32.mrf.mxu0  ;;  %1322 = vmatprep.subr.bf16.mxu0 %v1555_v1 }
 0x21e   :  { %1293 = vmatmul.mubr.bf16.vlgmr.msra.gmra.mxu0 %v385_v55  ;;  %v1468_v55 = vld [vmem:[#allocation2 + $0x1f8] ss:$40 sps:$4 sm:$0xff]  }
 0x21f   :  { %1338 = vmatprep.mubr.msk.bf16.mxu0 %vm1556_vm0, %v1555_v1  ;;  %1323 = vmatpush3.bf16.msra.mxu0 %v1459_v27  ;;  %v1476_v27 = vld [vmem:[#allocation2 + $0x1fc] ss:$40 sps:$4 sm:$0xff]  }
 0x220   :  { %1324 = vmatprep.subr.bf16.mxu0 %v1555_v1 }
 0x223   :  { %1325 = vmatpush3.bf16.msra.mxu0 %v1460_v28  ;;  %v1477_v28 = vld [vmem:[#allocation2 + $0x1ac] ss:$40 sps:$4 sm:$0xff]  }
 0x224   :  { %1326 = vmatprep.subr.bf16.mxu0 %v1555_v1 }
 0x227   :  { %1327 = vmatpush3.bf16.msra.mxu0 %v1461_v29  ;;  %v1478_v29 = vld [vmem:[#allocation2 + $0x15c] ss:$40 sps:$4 sm:$0xff]  }
 0x228   :  { %1328 = vmatprep.subr.bf16.mxu0 %v1555_v1 }
 0x22b   :  { %1329 = vmatpush3.bf16.msra.mxu0 %v1462_v30  ;;  %v1479_v30 = vld [vmem:[#allocation2 + $0x10c] ss:$40 sps:$4 sm:$0xff]  }
 0x22c   :  { %1330 = vmatprep.subr.bf16.mxu0 %v1555_v1 }
 0x22f   :  { %1331 = vmatpush3.bf16.msra.mxu0 %v1463_v31  ;;  %v1480_v31 = vld [vmem:[#allocation2 + $0xbc] ss:$40 sps:$4 sm:$0xff]  }
 0x230   :  { %1332 = vmatprep.subr.bf16.mxu0 %v1555_v1 }
 0x233   :  { %1333 = vmatpush3.bf16.msra.mxu0 %v1464_v32  ;;  %v1481_v32 = vld [vmem:[#allocation2 + $0x6c] ss:$40 sps:$4 sm:$0xff]  }
 0x234   :  { %1334 = vmatprep.subr.bf16.mxu0 %v1555_v1 }
 0x237   :  { %1335 = vmatpush3.bf16.msra.mxu0 %v1465_v33  ;;  %v1482_v33 = vld [vmem:[#allocation2 + $0x1c] ss:$40 sps:$4 sm:$0xff]  }
 0x238   :  { %1336 = vmatprep.subr.bf16.mxu0 %v1555_v1 }
 0x23b   :  { %1337 = vmatpush3.bf16.msra.mxu0 %v1466_v34  ;;  %v1483_v34 = vld [vmem:[#allocation2 + $0x250] ss:$40 sps:$4 sm:$0xff]  }
 0x23c   :  { %1362 = vmatprep.subr.bf16.mxu0 %v1555_v1 }
 0x2de   :  { %v421_v56 = vpop.f32.mrf.mxu0 }
 0x2df   :  { %v428_v57 = vsel %vm427_vm4, %v421_v56, -inf }
 0x2e0   :  { %429 = vmax.xlane.f32.xlu0 %v428_v57  ;;  %v1294_v58 = vpop.f32.mrf.mxu0  ;;  %v1470_v57 = vld [vmem:[#allocation2 + $0x158] ss:$40 sps:$4 sm:$0xff]  }
 0x2e1   :  { %v1471_v58 = vld [vmem:[#allocation2 + $0x108] ss:$40 sps:$4 sm:$0xff]  }
 0x2e2   :  { %v424_v59 = vpop.f32.mrf.mxu0 }
 0x2e3   :  { %v1472_v59 = vld [vmem:[#allocation2 + $0xb8] ss:$40 sps:$4 sm:$0xff]  }
 0x2e4   :  { %v1295_v60 = vpop.f32.mrf.mxu0 }
 0x2e5   :  { %v1473_v60 = vld [vmem:[#allocation2 + $0x68] ss:$40 sps:$4 sm:$0xff]  }
 0x369   :  { %v430_v61 = vpop.xlane.xlu0 %429 }
 0x36a   :  { %v431_v62 = vsub.f32 %v421_v56, %v430_v61  ;;  %v1469_v56 = vld [vmem:[#allocation2 + $0x1a8] ss:$40 sps:$4 sm:$0xff]   ;;  %v1474_v61 = vld [vmem:[#allocation2 + $0x18] ss:$40 sps:$4 sm:$0xff]  }
 0x36c   :  { %v432_v63 = vmul.f32 1.442695, %v431_v62  ;;  %v636_v62 = vsub.s32 0, %v1640_v42 }
 0x36e   :  { %1491 = vpow2.f32 %v432_v63  ;;  %v637_v63 = vrot.slane %v1642_v44, %v636_v62 }
 0x37b   :  { %v1492_v0 = vpop.eup %1491 }
 0x37c   :  { %v434_v2 = vsel %vm427_vm4, %v1492_v0, 0.0 }
 0x37d   :  { %435 = vadd.xlane.f32.xlu1 %v434_v2 }
 0x406   :  { %v436_v3 = vpop.xlane.xlu1 %435 }
 0x407   :  { %1493 = vrcp.f32 %v436_v3 }
 0x414   :  { %v1494_v4 = vpop.eup %1493 }
 0x415   :  { %v438_v5 = vmul.f32 %v1494_v4, %v1492_v0 }
 0x417   :  { %v439_v7 = vpack.c.bf16 %v438_v5, %v438_v5 }
 0x419   :  { %1299 = vmatmul.mubr.msk.bf16.vlgmr.msra.gmra.mxu1 %vm427_vm4, %v439_v7 }
 0x41a   :  { %1303 = vmatpush3.bf16.msra.mxu1 %v1451_v6  ;;  %1318 = vmatprep.mubr.msk.bf16.mxu1 %vm1556_vm0, %v1555_v1 }
 0x41b   :  { %1304 = vmatprep.subr.bf16.mxu1 %v1555_v1 }
 0x41e   :  { %1305 = vmatpush3.bf16.msra.mxu1 %v1452_v8 }
 0x41f   :  { %1306 = vmatprep.subr.bf16.mxu1 %v1555_v1 }
 0x422   :  { %1307 = vmatpush3.bf16.msra.mxu1 %v1453_v9 }
 0x423   :  { %1308 = vmatprep.subr.bf16.mxu1 %v1555_v1 }
 0x426   :  { %1309 = vmatpush3.bf16.msra.mxu1 %v1454_v10 }
 0x427   :  { %1310 = vmatprep.subr.bf16.mxu1 %v1555_v1 }
 0x42a   :  { %1311 = vmatpush3.bf16.msra.mxu1 %v1455_v11 }
 0x42b   :  { %1312 = vmatprep.subr.bf16.mxu1 %v1555_v1 }
 0x42e   :  { %1313 = vmatpush3.bf16.msra.mxu1 %v1456_v12 }
 0x42f   :  { %1314 = vmatprep.subr.bf16.mxu1 %v1555_v1 }
 0x432   :  { %1315 = vmatpush3.bf16.msra.mxu1 %v1457_v13 }
 0x433   :  { %1316 = vmatprep.subr.bf16.mxu1 %v1555_v1 }
 0x436   :  { %1317 = vmatpush3.bf16.msra.mxu1 %v1458_v14 }
 0x437   :  { %1342 = vmatprep.subr.bf16.mxu1 %v1555_v1 }
 0x4d9   :  { %v482_v15 = vpop.f32.mrf.mxu1 }
 0x4da   :  { %v488_v16 = vpack.c.bf16 %v482_v15, %v482_v15 }
 0x4db   :  { %v1300_v17 = vpop.f32.mrf.mxu1 }
 0x4dc   :  { %1319 = vmatmul.mubr.bf16.vlgmr.msra.gmra.mxu1 %v488_v16  ;;  %v754_v16 = vsub.s32 1, %v1640_v42 }
 0x4dd   :  { %v485_v18 = vpop.f32.mrf.mxu1  ;;  %1358 = vmatprep.mubr.msk.bf16.mxu1 %vm1556_vm0, %v1555_v1  ;;  %1343 = vmatpush3.bf16.msra.mxu1 %v1467_v26 }
 0x4de   :  { %1344 = vmatprep.subr.bf16.mxu1 %v1555_v1  ;;  %v755_v17 = vrot.slane %v1642_v44, %v754_v16 }
 0x4df   :  { %v1301_v19 = vpop.f32.mrf.mxu1 }
 0x4e1   :  { %1345 = vmatpush3.bf16.msra.mxu1 %v1468_v55  ;;  %v1486_v55 = vld [vmem:[#allocation2 + $0x160] ss:$40 sps:$4 sm:$0xff]  }
 0x4e2   :  { %1346 = vmatprep.subr.bf16.mxu1 %v1555_v1 }
 0x4e5   :  { %1347 = vmatpush3.bf16.msra.mxu1 %v1469_v56  ;;  %v1487_v56 = vld [vmem:[#allocation2 + $0x110] ss:$40 sps:$4 sm:$0xff]  }
 0x4e6   :  { %1348 = vmatprep.subr.bf16.mxu1 %v1555_v1 }
 0x4e9   :  { %1349 = vmatpush3.bf16.msra.mxu1 %v1470_v57  ;;  %v1489_v57 = vld [vmem:[#allocation2 + $0x70] ss:$40 sps:$4 sm:$0xff]  }
 0x4ea   :  { %1350 = vmatprep.subr.bf16.mxu1 %v1555_v1 }
 0x4ed   :  { %1351 = vmatpush3.bf16.msra.mxu1 %v1471_v58  ;;  %v1490_v58 = vld [vmem:[#allocation2 + $0x20] ss:$40 sps:$4 sm:$0xff]  }
 0x4ee   :  { %1352 = vmatprep.subr.bf16.mxu1 %v1555_v1 }
 0x4f1   :  { %1353 = vmatpush3.bf16.msra.mxu1 %v1472_v59  ;;  %v934_v59 = vrot.slane %v1642_v44, 6 }
 0x4f2   :  { %1354 = vmatprep.subr.bf16.mxu1 %v1555_v1 }
 0x4f5   :  { %1355 = vmatpush3.bf16.msra.mxu1 %v1473_v60 }
 0x4f6   :  { %1356 = vmatprep.subr.bf16.mxu1 %v1555_v1 }
 0x4f9   :  { %1357 = vmatpush3.bf16.msra.mxu1 %v1474_v61 }
 0x4fa   :  { %1382 = vmatprep.subr.bf16.mxu1 %v1555_v1 }
 0x59c   :  { %v587_v20 = vpop.f32.mrf.mxu1 }
 0x59d   :  { %v593_v21 = vadd.f32 %v587_v20, %v1603_v39 }
 0x59e   :  { %v1320_v22 = vpop.f32.mrf.mxu1 }
 0x59f   :  { %594 = vadd.xlane.f32.xlu1 %v593_v21  ;;  %v597_v24 = vmul.f32 %v593_v21, %v593_v21 }
 0x5a0   :  { %v590_v23 = vpop.f32.mrf.mxu1 }
 0x5a2   :  { %v1321_v25 = vpop.f32.mrf.mxu1 }
 0x5a3   :  { %598 = vadd.xlane.f32.xlu1 %v597_v24  ;;  %v1475_v25 = vld [vmem:[#allocation2 + $0x24c] ss:$40 sps:$4 sm:$0xff]  }
 0x628   :  { %v595_v35 = vpop.xlane.xlu1 %594 }
 0x629   :  { %v596_v36 = vmul.f32 0.03125, %v595_v35  ;;  %v1484_v35 = vld [vmem:[#allocation2 + $0x200] ss:$40 sps:$4 sm:$0xff]  }
 0x62b   :  { %v601_v38 = vmul.f32 %v596_v36, %v596_v36  ;;  %v603_v47 = vsub.f32 %v593_v21, %v596_v36  ;;  %v1485_v36 = vld [vmem:[#allocation2 + $0x1b0] ss:$40 sps:$4 sm:$0xff]  }
 0x62c   :  { %v599_v37 = vpop.xlane.xlu1 %598 }
 0x62d   :  { %v600_v39 = vmul.f32 0.03125, %v599_v37 }
 0x62f   :  { %v602_v40 = vsub.f32 %v600_v39, %v601_v38 }
 0x631   :  { %v604_v41 = vadd.f32 1e-05, %v602_v40 }
 0x633   :  { %1495 = vrsqrt.f32 %v604_v41 }
 0x640   :  { %v1496_v49 = vpop.eup %1495 }
 0x641   :  { %v606_v50 = vmul.f32 %v1496_v49, %v603_v47  ;;  %v865_v47 = vsub.s32 5, %v1640_v42  ;;  %v861_v49 = vrot.slane %v1642_v44, %v860_v46  ;;  %v1488_v42 = vld [vmem:[#allocation2 + $0xc0] ss:$40 sps:$4 sm:$0xff]  }
 0x643   :  { %v611_v52 = vmul.f32 %v610_v48, %v606_v50 }
 0x645   :  { %v616_v53 = vadd.f32 %v615_v51, %v611_v52  ;;  %v866_v52 = vrot.slane %v1642_v44, %v865_v47 }
 0x647   :  { %v617_v54 = vpack.c.bf16 %v616_v53, %v616_v53 }
 0x649   :  { %1339 = vmatmul.mubr.bf16.vlgmr.msra.gmra.mxu0 %v617_v54 }
 0x64a   :  { %1378 = vmatprep.mubr.msk.bf16.mxu0 %vm1556_vm0, %v1555_v1  ;;  %1363 = vmatpush3.bf16.msra.mxu0 %v1475_v25 }
 0x64b   :  { %1364 = vmatprep.subr.bf16.mxu0 %v1555_v1 }
 0x64e   :  { %1365 = vmatpush3.bf16.msra.mxu0 %v1476_v27 }
 0x64f   :  { %1366 = vmatprep.subr.bf16.mxu0 %v1555_v1 }
 0x652   :  { %1367 = vmatpush3.bf16.msra.mxu0 %v1477_v28 }
 0x653   :  { %1368 = vmatprep.subr.bf16.mxu0 %v1555_v1 }
 0x656   :  { %1369 = vmatpush3.bf16.msra.mxu0 %v1478_v29 }
 0x657   :  { %1370 = vmatprep.subr.bf16.mxu0 %v1555_v1 }
 0x65a   :  { %1371 = vmatpush3.bf16.msra.mxu0 %v1479_v30 }
 0x65b   :  { %1372 = vmatprep.subr.bf16.mxu0 %v1555_v1 }
 0x65e   :  { %1373 = vmatpush3.bf16.msra.mxu0 %v1480_v31 }
 0x65f   :  { %1374 = vmatprep.subr.bf16.mxu0 %v1555_v1 }
 0x662   :  { %1375 = vmatpush3.bf16.msra.mxu0 %v1481_v32 }
 0x663   :  { %1376 = vmatprep.subr.bf16.mxu0 %v1555_v1 }
 0x666   :  { %1377 = vmatpush3.bf16.msra.mxu0 %v1482_v33 }
 0x709   :  { %v720_v0 = vpop.f32.mrf.mxu0 }
 0x70a   :  { %v721_v2 = vadd.f32 %v720_v0, %v637_v63 }
 0x70b   :  { %v1340_v3 = vpop.f32.mrf.mxu0 }
 0x70c   :  { %v726_v4 = vmul.f32 %v721_v2, %v721_v2 }
 0x70d   :  { %v723_v5 = vpop.f32.mrf.mxu0 }
 0x70e   :  { %v727_v6 = vmul.f32 %v726_v4, %v721_v2  ;;  %v1042_v4 = vrot.slane %v1642_v44, 7 }
 0x70f   :  { %v1341_v7 = vpop.f32.mrf.mxu0 }
 0x710   :  { %v728_v8 = vmul.f32 0.044715, %v727_v6 }
 0x712   :  { %v729_v9 = vadd.f32 %v728_v8, %v721_v2 }
 0x714   :  { %v730_v10 = vmul.f32 0.7978846, %v729_v9 }
 0x716   :  { %1497 = vtanh.f32 %v730_v10 }
 0x723   :  { %v1498_v11 = vpop.eup %1497 }
 0x724   :  { %v732_v12 = vadd.f32 1.0, %v1498_v11 }
 0x726   :  { %v733_v13 = vmul.f32 0.5, %v732_v12 }
 0x728   :  { %v734_v14 = vmul.f32 %v733_v13, %v721_v2 }
 0x72a   :  { %v735_v15 = vpack.c.bf16 %v734_v14, %v734_v14 }
 0x72c   :  { %1359 = vmatmul.mubr.bf16.vlgmr.msra.gmra.mxu1 %v735_v15 }
 0x72d   :  { %1398 = vmatprep.mubr.msk.bf16.mxu1 %vm1556_vm0, %v1555_v1  ;;  %1383 = vmatpush3.bf16.msra.mxu1 %v1483_v34 }
 0x72e   :  { %1384 = vmatprep.subr.bf16.mxu1 %v1555_v1 }
 0x731   :  { %1385 = vmatpush3.bf16.msra.mxu1 %v1484_v35 }
 0x732   :  { %1386 = vmatprep.subr.bf16.mxu1 %v1555_v1 }
 0x735   :  { %1387 = vmatpush3.bf16.msra.mxu1 %v1485_v36 }
 0x736   :  { %1388 = vmatprep.subr.bf16.mxu1 %v1555_v1 }
 0x739   :  { %1389 = vmatpush3.bf16.msra.mxu1 %v1486_v55 }
 0x73a   :  { %1390 = vmatprep.subr.bf16.mxu1 %v1555_v1 }
 0x73d   :  { %1391 = vmatpush3.bf16.msra.mxu1 %v1487_v56 }
 0x73e   :  { %1392 = vmatprep.subr.bf16.mxu1 %v1555_v1 }
 0x741   :  { %1393 = vmatpush3.bf16.msra.mxu1 %v1488_v42 }
 0x742   :  { %1394 = vmatprep.subr.bf16.mxu1 %v1555_v1 }
 0x745   :  { %1395 = vmatpush3.bf16.msra.mxu1 %v1489_v57 }
 0x746   :  { %1396 = vmatprep.subr.bf16.mxu1 %v1555_v1 }
 0x749   :  { %1397 = vmatpush3.bf16.msra.mxu1 %v1490_v58 }
 0x7ec   :  { %v838_v18 = vpop.f32.mrf.mxu1 }
 0x7ed   :  { %v839_v19 = vadd.f32 %v838_v18, %v755_v17 }
 0x7ee   :  { %v1360_v20 = vpop.f32.mrf.mxu1 }
 0x7ef   :  { %v844_v21 = vadd.f32 %v839_v19, %v616_v53 }
 0x7f0   :  { %v841_v22 = vpop.f32.mrf.mxu1 }
 0x7f1   :  { %845 = vadd.xlane.f32.xlu1 %v844_v21  ;;  %v848_v24 = vmul.f32 %v844_v21, %v844_v21 }
 0x7f2   :  { %v1361_v23 = vpop.f32.mrf.mxu1 }
 0x7f5   :  { %849 = vadd.xlane.f32.xlu1 %v848_v24 }
 0x87a   :  { %v846_v37 = vpop.xlane.xlu1 %845 }
 0x87b   :  { %v847_v38 = vmul.f32 0.03125, %v846_v37 }
 0x87d   :  { %v852_v40 = vmul.f32 %v847_v38, %v847_v38  ;;  %v854_v48 = vsub.f32 %v844_v21, %v847_v38 }
 0x87e   :  { %v850_v39 = vpop.xlane.xlu1 %849 }
 0x87f   :  { %v851_v41 = vmul.f32 0.03125, %v850_v39 }
 0x881   :  { %v853_v43 = vsub.f32 %v851_v41, %v852_v40 }
 0x883   :  { %v855_v45 = vadd.f32 1e-05, %v853_v43 }
 0x885   :  { %1499 = vrsqrt.f32 %v855_v45 }
 0x892   :  { %v1500_v50 = vpop.eup %1499 }
 0x893   :  { %v857_v51 = vmul.f32 %v1500_v50, %v854_v48 }
 0x895   :  { %v862_v53 = vmul.f32 %v861_v49, %v857_v51 }
 0x897   :  { %v867_v54 = vadd.f32 %v866_v52, %v862_v53 }
 0x899   :  { %v868_v26 = vpack.c.bf16 %v867_v54, %v867_v54 }
 0x89b   :  { %1379 = vmatmul.mubr.bf16.vlgmr.msra.gmra.mxu0 %v868_v26 }
 0x95b   :  { %v970_v60 = vpop.f32.mrf.mxu0 }
 0x95c   :  { %v971_v61 = vadd.f32 %v970_v60, %v934_v59 }
 0x95d   :  { %v1380_v62 = vpop.f32.mrf.mxu0 }
 0x95e   :  { %1501 = vtanh.f32 %v971_v61 }
 0x95f   :  { %v973_v63 = vpop.f32.mrf.mxu0 }
 0x961   :  { %v1381_v0 = vpop.f32.mrf.mxu0 }
 0x96b   :  { %v1502_v2 = vpop.eup %1501 }
 0x96c   :  { %v977_v3 = vpack.c.bf16 %v1502_v2, %v1502_v2 }
 0x96e   :  { %1399 = vmatmul.mubr.bf16.vlgmr.msra.gmra.mxu1 %v977_v3 }
 0xa2e   :  { %v1078_v5 = vpop.f32.mrf.mxu1 }
 0xa2f   :  { %v1079_v6 = vadd.f32 %v1078_v5, %v1042_v4 }
 0xa30   :  { %v1400_v7 = vpop.f32.mrf.mxu1 }
 0xa31   :  { %v1182_v8 = vmul.f32 -1.442695, %v1079_v6 }
 0xa32   :  { %v1081_v1 = vpop.f32.mrf.mxu1 }
 0xa33   :  { %1503 = vpow2.f32 %v1182_v8 }
 0xa34   :  { %v1401_v9 = vpop.f32.mrf.mxu1 }
 0xa40   :  { %v1504_v10 = vpop.eup %1503 }
 0xa41   :  { %v1087_v11 = vadd.f32 1.0, %v1504_v10 }
 0xa43   :  { %1505 = vrcp.f32 %v1087_v11 }
 0xa50   :  { %v1506_v12 = vpop.eup %1505 }
 0xa51   :  { %1090 = vst [vmem:[#allocation5] sm:$0x1] %v1506_v12 }
 0xa52   :  { %1538 = shalt.err (!%p1535_p9)
}
 0xa53   :  { %1100 = dma.vmem_to_hbm [thread:$0]  %s1098_s1, 16, %s1689_s2, [#allocation4]  }
 0xa54   :  { %1549 = dma.done.wait [#allocation4], 16  }
 0xa55   :  { %1550 = vsyncadd [#allocation4], 4294967280 }
 0xa56   :  { %1104 = vsyncpa [#allocation3], 1 }
 0xa57   :  { %1105 = vsyncpa [#allocation4], 1 }

</bundles_post_ra>
